<compile_context>
chip_gen: v7x
topology: tpu7x:2x2x1
jax: 0.10.0
libtpu: 0.0.40
codegen_flags: <defaults>
</compile_context>

<pallas_src>
import jax
import jax.numpy as jnp
from jax.experimental import pallas as pl
from jax.experimental.pallas import tpu as pltpu


def _gauss_kernel(mean, scale, cmax):
    # scale = -1 / (2 * std^2): negation folded into the constant.
    def kernel(x_ref, o_ref):
        x = x_ref[...].astype(jnp.float32)
        d = x - mean
        gauss = jnp.exp(d * d * scale)          # EUP exp; always > 0
        # Lower clamp (min=-0.1) is a no-op on exp() output, so minimum suffices.
        o_ref[...] = jnp.minimum(gauss, cmax).astype(o_ref.dtype)

    return kernel


def gauss_activation(x, mean=0.0, std=0.1, min_=-0.1, max_=0.1, tile_rows=4096):
    """Elementwise Gaussian activation + clamp via a tiled Pallas kernel.

    tile_rows=4096 -> 4096*128*4B = 2 MiB per f32 block; with double-buffered
    input + output that's ~8 MiB VMEM, safe on v5e/v6e (128 MiB) and v7x (64 MiB).
    """
    orig_shape = x.shape
    n = x.size

    flat = x.reshape(-1)

    # Rows of 128 lanes needed; tile is a multiple of 8 sublanes (>=8) and
    # capped at tile_rows so small inputs become a single small block.
    needed_rows = pl.cdiv(n, 128)
    tile_r = min(int(tile_rows), max(8, ((needed_rows + 7) // 8) * 8))

    # Pad the flat array so rows divide evenly into full tiles (no partial /
    # masked blocks, no (1, n) single-sublane fallback).
    block_elems = tile_r * 128
    n_pad = pl.cdiv(n, block_elems) * block_elems
    if n_pad != n:
        flat = jnp.pad(flat, (0, n_pad - n))

    x2 = flat.reshape(-1, 128)
    rows = x2.shape[0]
    grid = (rows // tile_r,)

    kernel = _gauss_kernel(float(mean), -1.0 / (2.0 * float(std) * float(std)),
                           float(max_))

    itemsize = jnp.dtype(x.dtype).itemsize
    cost = pl.CostEstimate(
        flops=3 * n_pad,            # sub, mul, mul per element
        transcendentals=n_pad,      # one exp per element
        bytes_accessed=2 * n_pad * itemsize,
    )

    out2 = pl.pallas_call(
        kernel,
        out_shape=jax.ShapeDtypeStruct(x2.shape, x2.dtype),
        grid=grid,
        in_specs=[pl.BlockSpec((tile_r, 128), lambda i: (i, 0))],
        out_specs=pl.BlockSpec((tile_r, 128), lambda i: (i, 0)),
        compiler_params=pltpu.CompilerParams(
            dimension_semantics=("parallel",)),
        cost_estimate=cost,
    )(x2)

    return out2.reshape(-1)[:n].reshape(orig_shape)


if __name__ == "__main__":
    # Small NCHW input, deterministic.
    key = jax.random.PRNGKey(0)
    x = jax.random.normal(key, (2, 4, 16, 16), dtype=jnp.float32) * 0.2

    out = gauss_activation(x, mean=0.0, std=0.1, min_=-0.1, max_=0.1)
    out = jax.block_until_ready(out)

    # Reference check in plain JAX.
    ref = jnp.clip(jnp.exp(-(x - 0.0) ** 2 / (2 * 0.1 ** 2)), -0.1, 0.1)
    assert out.shape == x.shape and out.dtype == x.dtype
    assert jnp.allclose(out, ref, atol=1e-6), "mismatch vs reference"

    print("KERNEL_OK")
</pallas_src>

<mosaic_0001>
module attributes {stable_mosaic.version = 11 : i64} {
  func.func @kernel(%arg0: i32, %arg1: memref<16x128xf32, #tpu.memory_space<vmem>>, %arg2: memref<16x128xf32, #tpu.memory_space<vmem>>) attributes {dimension_semantics = [#tpu.dimension_semantics<parallel>], iteration_bounds = array<i64: 1>, scalar_prefetch = 0 : i64, scratch_operands = 0 : i64, tpu.core_type = #tpu.core_type<tc>, window_params = [{transform_indices = @transform_0, window_bounds = array<i64: 16, 128>}, {transform_indices = @transform_1, window_bounds = array<i64: 16, 128>}]} {
    %c0 = arith.constant 0 : index
    %c0_0 = arith.constant 0 : index
    %0 = vector.load %arg1[%c0, %c0_0] : memref<16x128xf32, #tpu.memory_space<vmem>>, vector<16x128xf32>
    %cst = arith.constant 0.000000e+00 : f32
    %1 = vector.broadcast %cst : f32 to vector<16x128xf32>
    %2 = arith.subf %0, %1 : vector<16x128xf32>
    %3 = arith.mulf %2, %2 : vector<16x128xf32>
    %cst_1 = arith.constant -5.000000e+01 : f32
    %4 = vector.broadcast %cst_1 : f32 to vector<16x128xf32>
    %5 = arith.mulf %3, %4 : vector<16x128xf32>
    %6 = math.exp %5 : vector<16x128xf32>
    %cst_2 = arith.constant 1.000000e-01 : f32
    %7 = vector.broadcast %cst_2 : f32 to vector<16x128xf32>
    %8 = arith.minimumf %6, %7 : vector<16x128xf32>
    %c0_3 = arith.constant 0 : index
    %c0_4 = arith.constant 0 : index
    %9 = vector.load %arg2[%c0_3, %c0_4] : memref<16x128xf32, #tpu.memory_space<vmem>>, vector<16x128xf32>
    tpu.vector_store %arg2[%c0_3, %c0_4], %8 {strides = array<i32>} : memref<16x128xf32, #tpu.memory_space<vmem>>, vector<16x128xf32>,
    return
  }
  func.func @transform_0(%arg0: i32) -> (i32, i32) {
    %c0_i32 = arith.constant 0 : i32
    %c0_i32_0 = arith.constant 0 : i32
    return %arg0, %c0_i32 : i32, i32
  }
  func.func @transform_1(%arg0: i32) -> (i32, i32) {
    %c0_i32 = arith.constant 0 : i32
    %c0_i32_0 = arith.constant 0 : i32
    return %arg0, %c0_i32 : i32, i32
  }
}

</mosaic_0001>

<bundles_post_ra>
// kernel: tpu_custom_call.1
= control target key start
LH: loop header
LB: loop body
LE: loop exit
PB: predicated region body
PF: predicated region fallthrough
CT: control target
= control target key end

     0   :  { %6 = vsyncpa [#allocation3], 0  ;;  %s154_s0 = inlined_call_operand.hbm [shape: f32[16,128], index: 0, kind: input, shape index: {}]   ;;  %s155_s1 = inlined_call_operand.hbm [shape: f32[16,128], index: 1, kind: output, shape index: {}]  }
   0x1   :  { %7 = vsyncpa [#allocation4], 0  ;;  %s110_s6 = smov [#allocation2]   ;;  %s62_s10 = scalar_lea.hbm %s154_s0, 256 }
   0x2   :  { %s13_s7 = sshll.u32 %s110_s6, 4  ;;  %p63_p0 = scmp.ne.s32.totalorder %s154_s0, %s62_s10  ;;  %s14_s7 = int_to_ptr.vmem [resolvable:$true] %s13_s7 }
   0x3   :  { %p66_p1 = scmp.lt.u32.totalorder %s62_s10, %s154_s0 }
   0x5   :  { %p68_p2 = pnand %p66_p1, %p63_p0 }
   0x7   :  { %71 = shalt.err (!%p68_p2)
}
   0x8   :  { %s72_s15 = scalar_lea.vmem %s14_s7, 256  ;;  %p77_p4 = scmp.lt.s32.totalorder %s14_s7, %s14_s7 }
   0x9   :  { %p73_p3 = scmp.ne.s32.totalorder %s14_s7, %s72_s15  ;;  %p78_p5 = scmp.lt.s32.totalorder %s72_s15, %s72_s15 }
   0xb   :  { %p79_p6 = por %p78_p5, %p77_p4 }
   0xd   :  { %p80_p7 = pnand %p79_p6, %p73_p3 }
   0xf   :  { %83 = shalt.err (!%p80_p7)
}
  0x10   :  { %s111_s16 = smov 128   ;;  %s112_s17 = smov 8  }
  0x11   :  { %19 = dma.hbm_to_vmem [thread:$0]  %s154_s0, 256, %s14_s7, [#allocation3], %s111_s16, %s111_s16, %s112_s17  }
  0x12   :  { %106 = dma.done.wait [#allocation3], 256  }
  0x13   :  { %107 = vsyncadd [#allocation3], 4294967040  ;;  %v23_v0 = vld [vmem:[#allocation2] sm:$0xff]  ;;  %v24_v1 = vld [vmem:[#allocation2 + $0x8] sm:$0xff]  ;;  %s113_s20 = smov [#allocation5]  }
  0x14   :  { %v25_v2 = vmul.f32 %v23_v0, %v23_v0  ;;  %v26_v3 = vmul.f32 %v24_v1, %v24_v1  ;;  %s42_s21 = sshll.u32 %s113_s20, 4  ;;  %s43_s21 = int_to_ptr.vmem [resolvable:$true] %s42_s21 }
  0x15   :  { %s84_s0 = scalar_lea.vmem %s43_s21, 256  ;;  %p89_p9 = scmp.lt.s32.totalorder %s43_s21, %s43_s21 }
  0x16   :  { %v27_v4 = vmul.f32 -50.0, %v25_v2  ;;  %v28_v5 = vmul.f32 -50.0, %v26_v3  ;;  %p85_p8 = scmp.ne.s32.totalorder %s43_s21, %s84_s0  ;;  %p90_p10 = scmp.lt.s32.totalorder %s84_s0, %s84_s0 }
  0x18   :  { %v29_v6 = vmul.f32 1.442695, %v27_v4  ;;  %v31_v7 = vmul.f32 1.442695, %v28_v5  ;;  %p91_p11 = por %p90_p10, %p89_p9 }
  0x1a   :  { %58 = vpow2.f32 %v29_v6  ;;  %p92_p12 = pnand %p91_p11, %p85_p8 }
  0x1b   :  { %60 = vpow2.f32 %v31_v7 }
  0x24   :  { %v59_v8 = vpop.eup %58 }
  0x25   :  { %v61_v9 = vpop.eup %60  ;;  %v33_v10 = vmin.f32 %v59_v8, 0.1 }
  0x26   :  { %v34_v11 = vmin.f32 %v61_v9, 0.1 }
  0x27   :  { %35 = vst [vmem:[#allocation5] sm:$0xff] %v33_v10 }
  0x28   :  { %36 = vst [vmem:[#allocation5 + $0x8] sm:$0xff] %v34_v11 }
  0x29   :  { %95 = shalt.err (!%p92_p12)
}
  0x2a   :  { %s96_s24 = scalar_lea.hbm %s155_s1, 256 }
  0x2b   :  { %p97_p13 = scmp.ne.s32.totalorder %s155_s1, %s96_s24  ;;  %p100_p0 = scmp.lt.u32.totalorder %s96_s24, %s155_s1 }
  0x2d   :  { %p102_p1 = pnand %p100_p0, %p97_p13 }
  0x2f   :  { %105 = shalt.err (!%p102_p1)
}
  0x30   :  { %48 = dma.vmem_to_hbm [thread:$0]  %s43_s21, 256, %s155_s1, [#allocation4], %s111_s16, %s111_s16, %s112_s17  }
  0x31   :  { %108 = dma.done.wait [#allocation4], 256  }
  0x32   :  { %109 = vsyncadd [#allocation4], 4294967040 }
  0x33   :  { %52 = vsyncpa [#allocation3], 1 }
  0x34   :  { %53 = vsyncpa [#allocation4], 1 }

</bundles_post_ra>
